<compile_context>
chip_gen: v7x
topology: tpu7x:2x2x1
jax: 0.10.0
libtpu: 0.0.40
codegen_flags: <defaults>
</compile_context>

<pallas_src>
import functools
import math

import jax
import jax.numpy as jnp
from jax import lax
from jax.experimental import pallas as pl
from jax.experimental.pallas import tpu as pltpu

_INV_SQRT2 = 1.0 / math.sqrt(2.0)


def _cdiv(a, b):
    return (a + b - 1) // b


def _round_up(x, m):
    return _cdiv(x, m) * m


def _adapter_kernel(x_ref, w1_ref, b1_ref, w2_ref, b2_ref, o_ref):
    # x_ref: (bm, Dp) native dtype; w1: (Dp, Hp); b1: (1, Hp) f32;
    # w2: (Hp, Dp); b2: (1, Dp) f32; o_ref: (bm, Dp).
    x = x_ref[...]

    # fc1: native-dtype MXU inputs, f32 accumulation.
    h = jnp.dot(x, w1_ref[...], preferred_element_type=jnp.float32)
    h = h + b1_ref[...]

    # Exact erf-based GELU (PyTorch nn.GELU default).
    h = 0.5 * h * (1.0 + lax.erf(h * _INV_SQRT2))

    # dropout(p=0.0) == identity (elided).

    # fc2.
    y = jnp.dot(h.astype(w2_ref.dtype), w2_ref[...],
                preferred_element_type=jnp.float32)
    y = y + b2_ref[...]

    # Residual add in f32, cast back to the output dtype.
    o_ref[...] = (x.astype(jnp.float32) + y).astype(o_ref.dtype)


def _pick_block_m(m_rows, d_pad, itemsize, target_bytes=24 << 20):
    """Largest row tile (multiple of 8, <= 1024) whose double-buffered
    input + output streams fit in `target_bytes` of VMEM."""
    bm = target_bytes // max(1, 4 * d_pad * itemsize)  # 2 in-bufs + 2 out-bufs
    bm = max(8, min(1024, (bm // 8) * 8))
    bm = min(bm, _round_up(m_rows, 8))
    # Prefer >= 2 grid steps so both v7x TensorCores get work.
    if m_rows > 8 and _cdiv(m_rows, bm) < 2:
        bm = max(8, _round_up(_cdiv(m_rows, 2), 8))
    return bm


@functools.partial(jax.jit, static_argnames=("block_m",))
def adapter_forward(x, w1, b1, w2, b2, *, block_m=None):
    """x: [B, S, D]; returns x + fc2(gelu(fc1(x))) with fc1: D->H, fc2: H->D."""
    B, S, D = x.shape
    H = w1.shape[1]
    M = B * S

    # Lane-dense padded feature dims (multiples of 128).
    Dp = _round_up(D, 128)
    Hp = _round_up(H, 128)

    itemsize = jnp.dtype(x.dtype).itemsize
    bm = _pick_block_m(M, Dp, itemsize) if block_m is None else block_m
    n_steps = _cdiv(M, bm)
    Mp = n_steps * bm

    compute_dtype = x.dtype  # bf16 x -> bf16 weights -> full-rate MXU.

    x2 = x.reshape(M, D)
    if (Mp, Dp) != (M, D):
        x2 = jnp.pad(x2, ((0, Mp - M), (0, Dp - D)))

    w1p = w1.astype(compute_dtype)
    w2p = w2.astype(compute_dtype)
    if (Dp, Hp) != (D, H):
        w1p = jnp.pad(w1p, ((0, Dp - D), (0, Hp - H)))
        w2p = jnp.pad(w2p, ((0, Hp - H), (0, Dp - D)))

    b1p = b1.astype(jnp.float32).reshape(1, H)
    b2p = b2.astype(jnp.float32).reshape(1, D)
    if Hp != H:
        b1p = jnp.pad(b1p, ((0, 0), (0, Hp - H)))
    if Dp != D:
        b2p = jnp.pad(b2p, ((0, 0), (0, Dp - D)))

    # Explicit VMEM budget: streamed x/out tiles are double-buffered; the
    # resident weights keep the default two buffers (they are tiny).
    w_itemsize = jnp.dtype(compute_dtype).itemsize
    est_vmem = (4 * bm * Dp * itemsize            # x + out tiles, 2 bufs each
                + 4 * Dp * Hp * w_itemsize        # w1 + w2, 2 bufs each
                + 4 * (Hp + Dp) * 4               # biases
                + bm * Hp * 4)                    # hidden activation scratch
    vmem_limit = int(min(max(2 * est_vmem, 32 << 20), 64 << 20))

    w_bytes = 2 * Dp * Hp * w_itemsize + 4 * (Hp + Dp)
    cost = pl.CostEstimate(
        flops=4 * Mp * Dp * Hp,                   # two matmuls
        transcendentals=Mp * Hp,                  # erf
        bytes_accessed=2 * Mp * Dp * itemsize + w_bytes,
    )

    out = pl.pallas_call(
        _adapter_kernel,
        out_shape=jax.ShapeDtypeStruct((Mp, Dp), x.dtype),
        grid_spec=pltpu.PrefetchScalarGridSpec(
            num_scalar_prefetch=0,
            grid=(n_steps,),
            in_specs=[
                pl.BlockSpec((bm, Dp), lambda i: (i, 0)),   # x tile (streamed)
                pl.BlockSpec((Dp, Hp), lambda i: (0, 0)),   # w1 (resident)
                pl.BlockSpec((1, Hp), lambda i: (0, 0)),    # b1 (resident)
                pl.BlockSpec((Hp, Dp), lambda i: (0, 0)),   # w2 (resident)
                pl.BlockSpec((1, Dp), lambda i: (0, 0)),    # b2 (resident)
            ],
            out_specs=pl.BlockSpec((bm, Dp), lambda i: (i, 0)),
        ),
        compiler_params=pltpu.CompilerParams(
            dimension_semantics=("parallel",),
            vmem_limit_bytes=vmem_limit,
        ),
        cost_estimate=cost,
    )(x2, w1p, b1p, w2p, b2p)

    if (Mp, Dp) != (M, D):
        out = out[:M, :D]
    return out.reshape(B, S, D)


def _reference(x, w1, b1, w2, b2):
    xf = x.astype(jnp.float32)
    h = xf @ w1.astype(jnp.float32) + b1.astype(jnp.float32)
    h = 0.5 * h * (1.0 + lax.erf(h * _INV_SQRT2))
    y = h @ w2.astype(jnp.float32) + b2.astype(jnp.float32)
    return (xf + y).astype(x.dtype)


def _init_linear(key, fan_in, fan_out):
    # Deterministic init mimicking torch.nn.Linear (uniform +-1/sqrt(fan_in)).
    kw, kb = jax.random.split(key)
    bound = 1.0 / math.sqrt(fan_in)
    w = jax.random.uniform(kw, (fan_in, fan_out), jnp.float32, -bound, bound)
    b = jax.random.uniform(kb, (fan_out,), jnp.float32, -bound, bound)
    return w, b


if __name__ == "__main__":
    key = jax.random.PRNGKey(0)
    k_x, k_x2, k_fc1, k_fc2 = jax.random.split(key, 4)

    in_features = 32
    hidden_features = 16  # out_features defaults to in_features

    w1, b1 = _init_linear(k_fc1, in_features, hidden_features)
    w2, b2 = _init_linear(k_fc2, hidden_features, in_features)

    # Case 1: B=2, S=8 (M divides the row tile evenly).
    x = jax.random.normal(k_x, (2, 8, in_features), jnp.float32)
    out = jax.block_until_ready(adapter_forward(x, w1, b1, w2, b2))
    ref = _reference(x, w1, b1, w2, b2)
    assert out.shape == x.shape and out.dtype == x.dtype
    assert jnp.allclose(out, ref, atol=1e-5, rtol=1e-5), "mismatch vs reference"

    # Case 2: B=2, S=7 (exercises row padding of the flattened M axis).
    xb = jax.random.normal(k_x2, (2, 7, in_features), jnp.float32)
    outb = jax.block_until_ready(adapter_forward(xb, w1, b1, w2, b2))
    refb = _reference(xb, w1, b1, w2, b2)
    assert outb.shape == xb.shape and outb.dtype == xb.dtype
    assert jnp.allclose(outb, refb, atol=1e-5, rtol=1e-5), "mismatch vs reference (padded M)"

    print("KERNEL_OK")
</pallas_src>

<mosaic_0001>
module attributes {stable_mosaic.version = 11 : i64} {
  func.func @_adapter_kernel(%arg0: i32, %arg1: memref<8x128xf32, #tpu.memory_space<vmem>>, %arg2: memref<128x128xf32, #tpu.memory_space<vmem>>, %arg3: memref<1x128xf32, #tpu.memory_space<vmem>>, %arg4: memref<128x128xf32, #tpu.memory_space<vmem>>, %arg5: memref<1x128xf32, #tpu.memory_space<vmem>>, %arg6: memref<8x128xf32, #tpu.memory_space<vmem>>) attributes {dimension_semantics = [#tpu.dimension_semantics<parallel>], iteration_bounds = array<i64: 2>, scalar_prefetch = 0 : i64, scratch_operands = 0 : i64, tpu.core_type = #tpu.core_type<tc>, window_params = [{transform_indices = @transform_0, window_bounds = array<i64: 8, 128>}, {pipeline_mode = #tpu.pipeline_mode<synchronous>, transform_indices = @transform_1, window_bounds = array<i64: 128, 128>}, {pipeline_mode = #tpu.pipeline_mode<synchronous>, transform_indices = @transform_2, window_bounds = array<i64: 1, 128>}, {pipeline_mode = #tpu.pipeline_mode<synchronous>, transform_indices = @transform_3, window_bounds = array<i64: 128, 128>}, {pipeline_mode = #tpu.pipeline_mode<synchronous>, transform_indices = @transform_4, window_bounds = array<i64: 1, 128>}, {transform_indices = @transform_5, window_bounds = array<i64: 8, 128>}]} {
    %c0 = arith.constant 0 : index
    %c0_0 = arith.constant 0 : index
    %0 = vector.load %arg1[%c0, %c0_0] : memref<8x128xf32, #tpu.memory_space<vmem>>, vector<8x128xf32>
    %c0_1 = arith.constant 0 : index
    %c0_2 = arith.constant 0 : index
    %1 = vector.load %arg2[%c0_1, %c0_2] : memref<128x128xf32, #tpu.memory_space<vmem>>, vector<128x128xf32>
    %cst = arith.constant dense<0.000000e+00> : vector<8x128xf32>
    %2 = tpu.matmul %0, %1, %cst {dimension_numbers = #tpu.dot_dimension_numbers<[1], [0], [0], [1], [0, 0, 1, 1], [], []>} : vector<8x128xf32>, vector<128x128xf32>, vector<8x128xf32> -> vector<8x128xf32>
    %c0_3 = arith.constant 0 : index
    %c0_4 = arith.constant 0 : index
    %3 = vector.load %arg3[%c0_3, %c0_4] : memref<1x128xf32, #tpu.memory_space<vmem>>, vector<1x128xf32>
    %4 = vector.broadcast %3 : vector<1x128xf32> to vector<8x128xf32>
    %5 = arith.addf %2, %4 : vector<8x128xf32>
    %cst_5 = arith.constant 5.000000e-01 : f32
    %6 = vector.broadcast %cst_5 : f32 to vector<8x128xf32>
    %7 = arith.mulf %6, %5 : vector<8x128xf32>
    %cst_6 = arith.constant 0.707106769 : f32
    %8 = vector.broadcast %cst_6 : f32 to vector<8x128xf32>
    %9 = arith.mulf %5, %8 : vector<8x128xf32>
    %10 = math.erf %9 : vector<8x128xf32>
    %cst_7 = arith.constant 1.000000e+00 : f32
    %11 = vector.broadcast %cst_7 : f32 to vector<8x128xf32>
    %12 = arith.addf %11, %10 : vector<8x128xf32>
    %13 = arith.mulf %7, %12 : vector<8x128xf32>
    %c0_8 = arith.constant 0 : index
    %c0_9 = arith.constant 0 : index
    %14 = vector.load %arg4[%c0_8, %c0_9] : memref<128x128xf32, #tpu.memory_space<vmem>>, vector<128x128xf32>
    %cst_10 = arith.constant dense<0.000000e+00> : vector<8x128xf32>
    %15 = tpu.matmul %13, %14, %cst_10 {dimension_numbers = #tpu.dot_dimension_numbers<[1], [0], [0], [1], [0, 0, 1, 1], [], []>} : vector<8x128xf32>, vector<128x128xf32>, vector<8x128xf32> -> vector<8x128xf32>
    %c0_11 = arith.constant 0 : index
    %c0_12 = arith.constant 0 : index
    %16 = vector.load %arg5[%c0_11, %c0_12] : memref<1x128xf32, #tpu.memory_space<vmem>>, vector<1x128xf32>
    %17 = vector.broadcast %16 : vector<1x128xf32> to vector<8x128xf32>
    %18 = arith.addf %15, %17 : vector<8x128xf32>
    %19 = arith.addf %0, %18 : vector<8x128xf32>
    %c0_13 = arith.constant 0 : index
    %c0_14 = arith.constant 0 : index
    %20 = vector.load %arg6[%c0_13, %c0_14] : memref<8x128xf32, #tpu.memory_space<vmem>>, vector<8x128xf32>
    tpu.vector_store %arg6[%c0_13, %c0_14], %19 {strides = array<i32>} : memref<8x128xf32, #tpu.memory_space<vmem>>, vector<8x128xf32>,
    return
  }
  func.func @transform_0(%arg0: i32) -> (i32, i32) {
    %c0_i32 = arith.constant 0 : i32
    %c0_i32_0 = arith.constant 0 : i32
    return %arg0, %c0_i32 : i32, i32
  }
  func.func @transform_1(%arg0: i32) -> (i32, i32) {
    %c0_i32 = arith.constant 0 : i32
    %c0_i32_0 = arith.constant 0 : i32
    %c0_i32_1 = arith.constant 0 : i32
    return %c0_i32, %c0_i32_0 : i32, i32
  }
  func.func @transform_2(%arg0: i32) -> (i32, i32) {
    %c0_i32 = arith.constant 0 : i32
    %c0_i32_0 = arith.constant 0 : i32
    %c0_i32_1 = arith.constant 0 : i32
    return %c0_i32, %c0_i32_0 : i32, i32
  }
  func.func @transform_3(%arg0: i32) -> (i32, i32) {
    %c0_i32 = arith.constant 0 : i32
    %c0_i32_0 = arith.constant 0 : i32
    %c0_i32_1 = arith.constant 0 : i32
    return %c0_i32, %c0_i32_0 : i32, i32
  }
  func.func @transform_4(%arg0: i32) -> (i32, i32) {
    %c0_i32 = arith.constant 0 : i32
    %c0_i32_0 = arith.constant 0 : i32
    %c0_i32_1 = arith.constant 0 : i32
    return %c0_i32, %c0_i32_0 : i32, i32
  }
  func.func @transform_5(%arg0: i32) -> (i32, i32) {
    %c0_i32 = arith.constant 0 : i32
    %c0_i32_0 = arith.constant 0 : i32
    return %arg0, %c0_i32 : i32, i32
  }
}

</mosaic_0001>

<bundles_post_ra>
// kernel: adapter_forward.1
= control target key start
LH: loop header
LB: loop body
LE: loop exit
PB: predicated region body
PF: predicated region fallthrough
CT: control target
= control target key end

     0   :  { %s684_s18 = smov 0   ;;  %s830_s0 = inlined_call_operand.vmem [shape: f32[16,128], index: 0, kind: input, shape index: {}]   ;;  %s831_s1 = inlined_call_operand.vmem [shape: f32[128,128], index: 1, kind: input, shape index: {}]   ;;  %s832_s2 = inlined_call_operand.vmem [shape: f32[1,128], index: 2, kind: input, shape index: {}]   ;;  %s833_s3 = inlined_call_operand.vmem [shape: f32[128,128], index: 3, kind: input, shape index: {}]   ;;  %s834_s4 = inlined_call_operand.vmem [shape: f32[1,128], index: 4, kind: input, shape index: {}]   ;;  %s835_s5 = inlined_call_operand.vmem [shape: f32[16,128], index: 5, kind: output, shape index: {}]  }
   0x1 LB: > { %s467_s19 = sadd.s32 4294967295, %s649_s18   ;;  %p471_p0 = scmp.ge.s32.totalorder %s649_s18, 1  ;;  %s649_s18 = sphi %s684_s18, %s15_s18  }
   0x2   : > { %p186_p1 = scmp.lt.s32.totalorder %s649_s18, 3 }
   0x4   : > { %p187_p2 = pnand %p471_p0, %p186_p1 }
   0x5   : > { %v221_v0 = vld [vmem:[%s831_s1] sm:$0xff] (!%p187_p2)  ;;  %v222_v1 = vld [vmem:[%s831_s1 + $0x8] sm:$0xff] (!%p187_p2)  ;;  %v223_v2 = vld [vmem:[%s831_s1 + $0x10] sm:$0xff] (!%p187_p2)  ;;  %v651_v3 = vmov (!%p187_p2), 0.0|0.0   ;;  %vm652_vm0 = vmmov (!%p187_p2), 0   ;;  %v653_v6 = vmov (!%p187_p2), 0.0  }
   0x6   : > { %190 = sbr.rel (%p187_p2) target bundleno = 487 (0x1e7), region = 40  ;;  %582 = vmatprep.subr.bf16.mxu0 (!%p187_p2), %v651_v3  ;;  %v583_v4 = vpack.c.bf16 (!%p187_p2), %v222_v1, %v221_v0  ;;  %v224_v5 = vld [vmem:[%s831_s1 + $0x18] sm:$0xff] (!%p187_p2)  ;;  %544 = vmatprep.mubr.msk.f32.mxu0 (!%p187_p2), %vm652_vm0, %v653_v6  ;;  %v225_v8 = vld [vmem:[%s831_s1 + $0x20] sm:$0xff] (!%p187_p2)  ;;  %v226_v9 = vld [vmem:[%s831_s1 + $0x28] sm:$0xff] (!%p187_p2)  ;;  %p212_p3 = scmp.lt.s32.totalorder (!%p187_p2), %s467_s19, 1 }
   0x7   : > { %606 = vmatprep.subr.bf16.mxu1 (!%p187_p2), %v651_v3  ;;  %579 = vmatprep.mubr.msk.f32.mxu1 (!%p187_p2), %vm652_vm0, %v653_v6  ;;  %v586_v7 = vpack.c.bf16 (!%p187_p2), %v224_v5, %v223_v2  ;;  %v319_v10 = vld [vmem:[%s833_s3] sm:$0xff] (!%p187_p2)  ;;  %v320_v11 = vld [vmem:[%s833_s3 + $0x8] sm:$0xff] (!%p187_p2)  ;;  %v321_v13 = vld [vmem:[%s833_s3 + $0x10] sm:$0xff] (!%p187_p2)  ;;  %v589_v15 = vpack.c.bf16 (!%p187_p2), %v226_v9, %v225_v8 }
   0x8   : > { %584 = vmatpush3.bf16.msra.mxu0 (!%p187_p2), %v583_v4  ;;  %v607_v12 = vpack.c.bf16 (!%p187_p2), %v320_v11, %v319_v10  ;;  %v322_v14 = vld [vmem:[%s833_s3 + $0x18] sm:$0xff] (!%p187_p2)  ;;  %v227_v16 = vld [vmem:[%s831_s1 + $0x30] sm:$0xff] (!%p187_p2)  ;;  %v323_v19 = vld [vmem:[%s833_s3 + $0x20] sm:$0xff] (!%p187_p2) }
   0x9   : > { %585 = vmatprep.subr.bf16.mxu0 (!%p187_p2), %v651_v3  ;;  %v228_v17 = vld [vmem:[%s831_s1 + $0x38] sm:$0xff] (!%p187_p2)  ;;  %v610_v18 = vpack.c.bf16 (!%p187_p2), %v322_v14, %v321_v13  ;;  %v324_v20 = vld [vmem:[%s833_s3 + $0x28] sm:$0xff] (!%p187_p2)  ;;  %v229_v22 = vld [vmem:[%s831_s1 + $0x40] sm:$0xff] (!%p187_p2) }
   0xa   : > { %608 = vmatpush3.bf16.msra.mxu1 (!%p187_p2), %v607_v12  ;;  %v592_v21 = vpack.c.bf16 (!%p187_p2), %v228_v17, %v227_v16  ;;  %v230_v23 = vld [vmem:[%s831_s1 + $0x48] sm:$0xff] (!%p187_p2)  ;;  %v613_v24 = vpack.c.bf16 (!%p187_p2), %v324_v20, %v323_v19  ;;  %v231_v26 = vld [vmem:[%s831_s1 + $0x50] sm:$0xff] (!%p187_p2)  ;;  %v232_v27 = vld [vmem:[%s831_s1 + $0x58] sm:$0xff] (!%p187_p2) }
   0xb   : > { %609 = vmatprep.subr.bf16.mxu1 (!%p187_p2), %v651_v3  ;;  %v595_v25 = vpack.c.bf16 (!%p187_p2), %v230_v23, %v229_v22  ;;  %v598_v28 = vpack.c.bf16 (!%p187_p2), %v232_v27, %v231_v26  ;;  %v233_v29 = vld [vmem:[%s831_s1 + $0x60] sm:$0xff] (!%p187_p2)  ;;  %v234_v30 = vld [vmem:[%s831_s1 + $0x68] sm:$0xff] (!%p187_p2)  ;;  %v235_v32 = vld [vmem:[%s831_s1 + $0x70] sm:$0xff] (!%p187_p2) }
   0xc   : > { %587 = vmatpush3.bf16.msra.mxu0 (!%p187_p2), %v586_v7  ;;  %v601_v31 = vpack.c.bf16 (!%p187_p2), %v234_v30, %v233_v29  ;;  %v236_v33 = vld [vmem:[%s831_s1 + $0x78] sm:$0xff] (!%p187_p2)  ;;  %v325_v36 = vld [vmem:[%s833_s3 + $0x30] sm:$0xff] (!%p187_p2)  ;;  %v327_v39 = vld [vmem:[%s833_s3 + $0x40] sm:$0xff] (!%p187_p2) }
   0xd   : > { %588 = vmatprep.subr.bf16.mxu0 %v651_v3  ;;  %s837_s19 = smov (!%p212_p3, %s467_s19), 1  ;;  %v604_v34 = vpack.c.bf16 %v236_v33, %v235_v32  ;;  %v326_v37 = vld [vmem:[%s833_s3 + $0x38] sm:$0xff]  ;;  %v328_v40 = vld [vmem:[%s833_s3 + $0x48] sm:$0xff]  ;;  %v329_v42 = vld [vmem:[%s833_s3 + $0x50] sm:$0xff] }
   0xe   : > { %611 = vmatpush3.bf16.msra.mxu1 %v610_v18  ;;  %s472_s16 = sshll.u32 %s837_s19, 3  ;;  %v616_v38 = vpack.c.bf16 %v326_v37, %v325_v36  ;;  %v619_v41 = vpack.c.bf16 %v328_v40, %v327_v39  ;;  %v330_v43 = vld [vmem:[%s833_s3 + $0x58] sm:$0xff]  ;;  %v331_v45 = vld [vmem:[%s833_s3 + $0x60] sm:$0xff]  ;;  %v332_v46 = vld [vmem:[%s833_s3 + $0x68] sm:$0xff] }
   0xf   : > { %612 = vmatprep.subr.bf16.mxu1 %v651_v3  ;;  %s215_s21 = scalar_lea.vmem %s830_s0, %s472_s16  ;;  %v622_v44 = vpack.c.bf16 %v330_v43, %v329_v42  ;;  %v625_v47 = vpack.c.bf16 %v332_v46, %v331_v45  ;;  %v333_v48 = vld [vmem:[%s833_s3 + $0x70] sm:$0xff]  ;;  %v334_v49 = vld [vmem:[%s833_s3 + $0x78] sm:$0xff]  ;;  %v474_v51 = vld [vmem:[%s832_s2] ss:$0 sm:$0xff]  ;;  %s219_s26 = scalar_lea.vmem %s835_s5, %s472_s16 }
  0x10   : > { %590 = vmatpush3.bf16.msra.mxu0 %v589_v15  ;;  %v220_v35 = vld [vmem:[%s215_s21] sm:$0xff]  ;;  %v628_v50 = vpack.c.bf16 %v334_v49, %v333_v48 }
  0x11   : > { %591 = vmatprep.subr.bf16.mxu0 %v651_v3  ;;  %v475_v60 = vld [vmem:[%s834_s4] ss:$0 sm:$0xff] }
  0x12   : > { %614 = vmatpush3.bf16.msra.mxu1 %v613_v24 }
  0x13   : > { %615 = vmatprep.subr.bf16.mxu1 %v651_v3 }
  0x14   : > { %593 = vmatpush3.bf16.msra.mxu0 %v592_v21 }
  0x15   : > { %594 = vmatprep.subr.bf16.mxu0 %v651_v3 }
  0x16   : > { %617 = vmatpush3.bf16.msra.mxu1 %v616_v38 }
  0x17   : > { %618 = vmatprep.subr.bf16.mxu1 %v651_v3 }
  0x18   : > { %596 = vmatpush3.bf16.msra.mxu0 %v595_v25 }
  0x19   : > { %597 = vmatprep.subr.bf16.mxu0 %v651_v3 }
  0x1a   : > { %620 = vmatpush3.bf16.msra.mxu1 %v619_v41 }
  0x1b   : > { %621 = vmatprep.subr.bf16.mxu1 %v651_v3 }
  0x1c   : > { %599 = vmatpush3.bf16.msra.mxu0 %v598_v28 }
  0x1d   : > { %600 = vmatprep.subr.bf16.mxu0 %v651_v3 }
  0x1e   : > { %623 = vmatpush3.bf16.msra.mxu1 %v622_v44 }
  0x1f   : > { %624 = vmatprep.subr.bf16.mxu1 %v651_v3 }
  0x20   : > { %602 = vmatpush3.bf16.msra.mxu0 %v601_v31 }
  0x21   : > { %603 = vmatprep.subr.bf16.mxu0 %v651_v3 }
  0x22   : > { %626 = vmatpush3.bf16.msra.mxu1 %v625_v47 }
  0x23   : > { %627 = vmatprep.subr.bf16.mxu1 %v651_v3 }
  0x24   : > { %605 = vmatpush3.bf16.msra.mxu0 %v604_v34 }
  0x26   : > { %629 = vmatpush3.bf16.msra.mxu1 %v628_v50 }
  0x27   : > { %545 = vmatmul.mubr.f32.vlgmr.msra.gmra.mrb[0].mxu0 %v220_v35 }
  0xfa   : > { %v310_v52 = vpop.f32.mrb[0].mxu0 }
  0xfb   : > { %v311_v53 = vadd.f32 %v474_v51, %v310_v52  ;;  %v546_v54 = vpop.f32.mrb[1].mxu0 }
  0xfd   : > { %v315_v55 = vmul.f32 0.70710677, %v311_v53  ;;  %v314_v57 = vmul.f32 0.5, %v311_v53 }
  0xff   : > { %641 = verf.f32 %v315_v55 }
 0x109   : > { %v642_v56 = vpop.eup %641 }
 0x10a   : > { %v317_v58 = vadd.f32 1.0, %v642_v56 }
 0x10c   : > { %v318_v59 = vmul.f32 %v317_v58, %v314_v57 }
 0x10e   : > { %580 = vmatmul.mubr.f32.vlgmr.msra.gmra.mrb[0].mxu1 %v318_v59 }
 0x1e1   : > { %v408_v61 = vpop.f32.mrb[0].mxu1 }
 0x1e2   : > { %v409_v62 = vadd.f32 %v475_v60, %v408_v61  ;;  %v581_v63 = vpop.f32.mrb[1].mxu1 }
 0x1e4   : > { %v412_v0 = vadd.f32 %v409_v62, %v220_v35 }
 0x1e6   : > { %413 = vst [vmem:[%s219_s26] sm:$0xff] %v412_v0 }
 0x1e7 PF: > { %s15_s18 = sadd.s32 1, %s649_s18  }
 0x1e8   : > { %p12_p4 = scmp.ge.s32.totalorder %s15_s18, 4  }
 0x1ea   :  { %14 = sbr.rel (!%p12_p4) target bundleno = 1 (0x1), region = 70 }

</bundles_post_ra>
